<compile_context>
chip_gen: v7x
topology: tpu7x:2x2x1
jax: 0.10.0
libtpu: 0.0.40
codegen_flags: <defaults>
</compile_context>

<pallas_src>
import jax
import jax.numpy as jnp
from jax import lax
from jax.experimental import pallas as pl
from jax.experimental.pallas import tpu as pltpu


def _onehot_kernel(x_ref, o_ref):
    # x_ref: (1, 1, TS) int32 labels for one (batch, spatial-tile) block.
    # o_ref: (1, depth, TS) float32 one-hot output block.
    labels = x_ref[...]  # (1, 1, TS)
    # class index along axis 1, broadcast over the lane (TS) axis.
    classes = lax.broadcasted_iota(jnp.int32, o_ref.shape, 1)  # (1, depth, TS)
    # index_select on eye(depth) == equality against class indices.
    # (out-of-range / padding labels, e.g. -1, yield all-zero columns.)
    o_ref[...] = (labels == classes).astype(o_ref.dtype)


def _pick_tile(depth, s_pad128):
    """Lane-dense spatial tile size, budgeted for double-buffered VMEM."""
    # Per spatial lane, double-buffered: output depth*4B (f32) + input 4B (i32).
    vmem_budget = 16 * 1024 * 1024  # conservative: fits v7x/v5e scoped limits
    bytes_per_lane = 2 * (depth * 4 + 4)
    ts_max = max(128, (vmem_budget // bytes_per_lane) // 128 * 128)
    ts = min(2048, ts_max)          # >=512-1024 lanes hits the HBM roofline
    return min(ts, s_pad128)        # never bigger than the (padded) data


def one_hot_pallas(x_in, depth, out_dtype=jnp.float32):
    """x_in: (N, 1, H, W) integer labels in [0, depth). Returns (N, depth, H, W)."""
    N, C, H, W = x_in.shape
    assert C == 1, "OneHot expects a singleton channel dim (label map)"
    S = H * W

    # Lane-dense padding of the spatial axis.
    s_pad128 = ((S + 127) // 128) * 128
    TS = _pick_tile(depth, s_pad128)
    S_pad = ((s_pad128 + TS - 1) // TS) * TS

    x_flat = x_in.reshape(N, 1, S).astype(jnp.int32)
    if S_pad != S:
        # Pad with -1: matches no class -> all-zero columns, sliced off below.
        x_flat = jnp.pad(x_flat, ((0, 0), (0, 0), (0, S_pad - S)),
                         constant_values=-1)

    grid = (N, S_pad // TS)

    out = pl.pallas_call(
        _onehot_kernel,
        out_shape=jax.ShapeDtypeStruct((N, depth, S_pad), out_dtype),
        grid_spec=pltpu.PrefetchScalarGridSpec(
            num_scalar_prefetch=0,
            grid=grid,
            in_specs=[pl.BlockSpec((1, 1, TS), lambda n, s: (n, 0, s))],
            out_specs=pl.BlockSpec((1, depth, TS), lambda n, s: (n, 0, s)),
        ),
        compiler_params=pltpu.CompilerParams(
            dimension_semantics=("parallel", "parallel"),
            vmem_limit_bytes=64 * 1024 * 1024,
        ),
    )(x_flat)

    if S_pad != S:
        out = out[:, :, :S]
    return out.reshape(N, depth, H, W)


if __name__ == "__main__":
    # Deterministic setup mirroring OneHot.__init__(depth): the eye(depth)
    # "parameter" is built in-script (only used for the reference check —
    # the kernel realizes index_select(eye, x) as an equality compare).
    depth = 4
    eye = jnp.eye(depth, dtype=jnp.float32)

    key = jax.random.PRNGKey(0)
    N, H, W = 2, 16, 16
    x_in = jax.random.randint(key, (N, 1, H, W), minval=0, maxval=depth,
                              dtype=jnp.int32)

    out = one_hot_pallas(x_in, depth)
    out = jax.block_until_ready(out)

    # Reference: eye.index_select(0, flat_labels) -> view -> permute -> squeeze
    ref = eye[x_in.reshape(-1)].reshape(N, 1, H, W, depth)
    ref = jnp.transpose(ref, (0, 4, 1, 2, 3)).squeeze(axis=2).astype(jnp.float32)

    assert out.shape == (N, depth, H, W), out.shape
    assert out.dtype == jnp.float32
    assert jnp.array_equal(out, ref), "mismatch vs reference"
    print("KERNEL_OK")
</pallas_src>

<mosaic_0001>
module attributes {stable_mosaic.version = 11 : i64} {
  func.func @_onehot_kernel(%arg0: i32, %arg1: i32, %arg2: memref<1x1x256xi32, #tpu.memory_space<vmem>>, %arg3: memref<1x4x256xf32, #tpu.memory_space<vmem>>) attributes {dimension_semantics = [#tpu.dimension_semantics<parallel>, #tpu.dimension_semantics<parallel>], iteration_bounds = array<i64: 2, 1>, scalar_prefetch = 0 : i64, scratch_operands = 0 : i64, tpu.core_type = #tpu.core_type<tc>, window_params = [{transform_indices = @transform_0, window_bounds = array<i64: 1, 1, 256>}, {transform_indices = @transform_1, window_bounds = array<i64: 1, 4, 256>}]} {
    %c0 = arith.constant 0 : index
    %c0_0 = arith.constant 0 : index
    %c0_1 = arith.constant 0 : index
    %0 = vector.load %arg2[%c0, %c0_0, %c0_1] : memref<1x1x256xi32, #tpu.memory_space<vmem>>, vector<1x1x256xi32>
    %1 = tpu.iota {dimensions = array<i32: 1>} : vector<1x4x256xi32>
    %2 = vector.broadcast %0 : vector<1x1x256xi32> to vector<1x4x256xi32>
    %3 = arith.cmpi eq, %2, %1 : vector<1x4x256xi32>
    %4 = arith.extui %3 : vector<1x4x256xi1> to vector<1x4x256xi32>
    %5 = arith.sitofp %4 : vector<1x4x256xi32> to vector<1x4x256xf32>
    %c0_2 = arith.constant 0 : index
    %c0_3 = arith.constant 0 : index
    %c0_4 = arith.constant 0 : index
    %6 = vector.load %arg3[%c0_2, %c0_3, %c0_4] : memref<1x4x256xf32, #tpu.memory_space<vmem>>, vector<1x4x256xf32>
    tpu.vector_store %arg3[%c0_2, %c0_3, %c0_4], %5 {strides = array<i32>} : memref<1x4x256xf32, #tpu.memory_space<vmem>>, vector<1x4x256xf32>,
    return
  }
  func.func @transform_0(%arg0: i32, %arg1: i32) -> (i32, i32, i32) {
    %c0_i32 = arith.constant 0 : i32
    %c0_i32_0 = arith.constant 0 : i32
    return %arg0, %c0_i32, %arg1 : i32, i32, i32
  }
  func.func @transform_1(%arg0: i32, %arg1: i32) -> (i32, i32, i32) {
    %c0_i32 = arith.constant 0 : i32
    %c0_i32_0 = arith.constant 0 : i32
    return %arg0, %c0_i32, %arg1 : i32, i32, i32
  }
}

</mosaic_0001>

<bundles_post_ra>
// kernel: tpu_custom_call.1
= control target key start
LH: loop header
LB: loop body
LE: loop exit
PB: predicated region body
PF: predicated region fallthrough
CT: control target
= control target key end

     0   :  { %6 = vsyncpa [#allocation3], 0  ;;  %s658_s0 = inlined_call_operand.hbm [shape: s32[2,1,256], index: 0, kind: input, shape index: {}]   ;;  %s659_s1 = inlined_call_operand.hbm [shape: f32[2,4,256], index: 1, kind: output, shape index: {}]  }
   0x1   :  { %8 = vsyncpa [#allocation3 + $0x1], 0 }
   0x2   :  { %9 = vsyncpa [#allocation4], 0 }
   0x3   :  { %11 = vsyncpa [#allocation4 + $0x1], 0  ;;  %s485_s6 = smov 0   ;;  %s487_s7 = smov 0  }
   0x4   :  { %s489_s8 = smov 0   ;;  %s491_s9 = smov 0  }
   0x5   :  { %s493_s10 = smov 0   ;;  %s495_s11 = smov 0  }
   0x6 LB: > { %s276_s12 = sadd.s32 4294967295, %s470_s11   ;;  %s277_s13 = sadd.s32 4294967294, %s470_s11   ;;  %s470_s11 = sphi %s495_s11, %s17_s11   ;;  %s466_s10 = sphi %s493_s10, %s675_s10   ;;  %s462_s9 = sphi %s491_s9, %s674_s9   ;;  %s458_s8 = sphi %s489_s8, %s673_s8   ;;  %s454_s7 = sphi %s487_s7, %s672_s7   ;;  %s450_s6 = sphi %s485_s6, %s671_s6  }
   0x7   : > { %s29_s14 = sadd.s32 1, %s466_s10  ;;  %s38_s15 = sadd.s32 1, %s458_s8 }
   0x8   : > { %p31_p0 = scmp.ge.s32.totalorder %s29_s14, 2  ;;  %p45_p1 = scmp.ne.s32.totalorder %s458_s8, %s454_s7 }
   0x9   : > { %p46_p2 = scmp.eq.s32.totalorder %s470_s11, 0  ;;  %p51_p3 = scmp.ne.s32.totalorder %s454_s7, %s450_s6 }
   0xa   : > { %s677_s14 = smov (%p31_p0, %s29_s14), 0  ;;  %p52_p5 = scmp.eq.s32.totalorder %s276_s12, 0 }
   0xb   : > { %p526_p4 = por %p46_p2, %p45_p1  ;;  %s33_s17 = ssub.s32 %s466_s10, %s677_s14 }
   0xc   : > { %p77_p6 = scmp.eq.s32.totalorder %s276_s12, 1  ;;  %p36_p7 = scmp.eq.s32.totalorder %s33_s17, 0 }
   0xd   : > { %p532_p8 = por %p52_p5, %p51_p3  ;;  %p83_p10 = scmp.eq.s32.totalorder %s277_s13, 1 }
   0xe   : > { %p536_p9 = por %p77_p6, %p45_p1  ;;  %p307_p13 = scmp.lt.s32.totalorder %s470_s11, 2 }
   0xf   : > { %s541_s20 = scalar_select %p36_p7, %s458_s8, %s38_s15  }
  0x10   : > { %s663_s19 = scalar_select %p536_p9, 1, 0 }
  0x11   : > { %p543_p11 = por %p83_p10, %p51_p3  ;;  %s103_s22 = sand.u32 1, %s458_s8  }
  0x12   : > { %s280_s23 = sshll.u32 %s103_s22, 1  ;;  %s293_s24 = sshll.u32 %s466_s10, 5 }
  0x13   : > { %s664_s21 = scalar_select %p543_p11, 1, 0 }
  0x14   : > { %s554_s27 = scalar_lea.hbm %s658_s0, %s293_s24  ;;  %s107_s28 = scalar_lea.vmem [#allocation2], %s280_s23 }
  0x15   : > { %s117_s29 = sshll.u32 %s107_s28, 4  ;;  %p560_p0 = pnand %p307_p13, %p526_p4  ;;  %s556_s29 = int_to_ptr.vmem [resolvable:$true] %s117_s29 }
  0x16   : > { %s104_s2 = scalar_lea.sflag [#allocation3], %s103_s22  ;;  %s358_s3 = scalar_lea.hbm %s554_s27, 32 }
  0x17   : > { %p359_p3 = scmp.ne.s32.totalorder %s554_s27, %s358_s3  ;;  %p360_p5 = pneg %p560_p0 }
  0x18   : > { %s363_s12 = scalar_lea.hbm %s658_s0, 64  ;;  %p364_p4 = scmp.lt.u32.totalorder %s554_s27, %s658_s0 }
  0x19   : > { %p361_p6 = pnand %p360_p5, %p359_p3  ;;  %p365_p10 = scmp.lt.u32.totalorder %s363_s12, %s358_s3 }
  0x1a   : > { %p367_p12 = scmp.lt.u32.totalorder %s358_s3, %s554_s27 }
  0x1b   : > { %p362_p7 = pneg %p361_p6  ;;  %p366_p13 = por %p365_p10, %p364_p4 }
  0x1d   : > { %p368_p1 = por %p367_p12, %p366_p13 }
  0x1f   : > { %p369_p2 = pnand %p368_p1, %p362_p7 }
  0x21   : > { %372 = shalt.err (!%p369_p2)
}
  0x22   : > { %s373_s16 = scalar_lea.vmem %s556_s29, 32  ;;  %s472_s17 = smov [#allocation2]  }
  0x23   : > { %p374_p3 = scmp.ne.s32.totalorder %s556_s29, %s373_s16  ;;  %s378_s22 = sshll.u32 %s472_s17, 4  ;;  %s379_s22 = int_to_ptr.vmem [resolvable:$false] %s378_s22 }
  0x24   : > { %s380_s23 = scalar_lea.vmem %s379_s22, 64  ;;  %p381_p9 = scmp.lt.s32.totalorder %s556_s29, %s379_s22 }
  0x25   : > { %p376_p6 = pnand %p374_p3, %p360_p5  ;;  %p382_p4 = scmp.lt.s32.totalorder %s380_s23, %s373_s16 }
  0x27   : > { %p377_p11 = pneg %p376_p6  ;;  %p383_p10 = por %p382_p4, %p381_p9 }
  0x29   : > { %p384_p12 = pnand %p383_p10, %p377_p11 }
  0x2b   : > { %387 = shalt.err (!%p384_p12)
}
  0x2c   : > { %302 = dma.hbm_to_vmem [thread:$0]  (!%p560_p0), %s554_s27, 32, %s556_s29, %s104_s2  }
  0x2d   : > { %p666_p1 = scmp.lt.s32.totalorder %s470_s11, 3  ;;  %p667_p2 = scmp.ge.s32.totalorder %s470_s11, 1 }
  0x2f   : > { %p123_p5 = pnand %p667_p2, %p666_p1 }
  0x30   : > { %s596_s24 = sand.u32 (!%p123_p5), 1, %s454_s7  }
  0x31   : > { %126 = sbr.rel (%p123_p5) target bundleno = 83 (0x53), region = 24  ;;  %s284_s25 = sshll.u32 (!%p123_p5), %s596_s24, 1 }
  0x32   : > { %s129_s26 = scalar_lea.sflag (!%p123_p5), [#allocation3], %s596_s24  ;;  %s132_s28 = scalar_lea.vmem (!%p123_p5), [#allocation2], %s284_s25 }
  0x38   : > { %441 = dma.done.wait (%p532_p8), %s129_s26, 32  }
  0x39   : > { %443 = vsyncadd (%p532_p8), %s129_s26, 4294967264  ;;  %v154_v0 = vlaneseq  ;;  %s285_s27 = sshll.u32 %s596_s24, 3  ;;  %v153_v4 = vld [vmem:[%s132_s28] sm:$0x3]  ;;  %s294_s2 = sshll.u32 %s462_s9, 7  ;;  %v473_v7 = vmov 0.0  }
  0x3a   : > { %s150_s29 = scalar_lea.vmem [#allocation5], %s285_s27  ;;  %s611_s4 = scalar_lea.hbm %s659_s1, %s294_s2 }
  0x3b   : > { %v155_v1 = vshrl.u32 %v154_v0, 7  ;;  %s192_s30 = sshll.u32 %s150_s29, 4  ;;  %s176_s5 = scalar_lea.sflag [#allocation4], %s596_s24  ;;  %s606_s30 = int_to_ptr.vmem [resolvable:$true] %s192_s30 }
  0x3c   : > { %s388_s12 = scalar_lea.vmem %s606_s30, 128  ;;  %p668_p9 = scmp.ne.s32.totalorder %s663_s19, 0 }
  0x3d   : > { %v158_v2 = vsub.s32 0, %v155_v1  ;;  %v162_v3 = vsub.s32 1, %v155_v1  ;;  %p389_p8 = scmp.ne.s32.totalorder %s606_s30, %s388_s12  ;;  %s474_s9 = smov [#allocation5]  }
  0x3e   : > { %s392_s13 = sshll.u32 %s474_s9, 4  ;;  %s393_s13 = int_to_ptr.vmem [resolvable:$false] %s392_s13 }
  0x3f   : > { %v159_v5 = vrot.slane %v153_v4, %v158_v2  ;;  %v163_v6 = vrot.slane %v153_v4, %v162_v3  ;;  %p390_p11 = pnand %p389_p8, %p668_p9  ;;  %s394_s15 = scalar_lea.vmem %s393_s13, 256 }
  0x40   : > { %p395_p7 = scmp.lt.s32.totalorder %s606_s30, %s393_s13  ;;  %p396_p13 = scmp.lt.s32.totalorder %s394_s15, %s388_s12 }
  0x41   : > { %vm164_vm0 = vcmp.eq.s32.totalorder %v159_v5, %v155_v1  ;;  %vm165_vm1 = vcmp.eq.s32.totalorder %v163_v6, %v155_v1  ;;  %p391_p0 = pneg %p390_p11 }
  0x42   : > { %v286_v8 = vsel %vm164_vm0, 1.0, %v473_v7  ;;  %v287_v9 = vsel %vm165_vm1, 1.0, %v473_v7  ;;  %p397_p3 = por %p396_p13, %p395_p7 }
  0x43   : > { %v172_v10 = vcombine.low %v286_v8, %v287_v9 }
  0x44   : > { %p398_p6 = pnand %p397_p3, %p391_p0 }
  0x45   : > { %174 = vst [vmem:[%s150_s29] sm:$0xff] %v172_v10 }
  0x46   : > { %401 = shalt.err (!%p398_p6)
}
  0x47   : > { %s402_s16 = scalar_lea.hbm %s611_s4, 128  ;;  %s406_s23 = scalar_lea.hbm %s659_s1, 256 }
  0x48   : > { %p403_p4 = scmp.ne.s32.totalorder %s611_s4, %s402_s16  ;;  %p407_p1 = scmp.lt.u32.totalorder %s611_s4, %s659_s1 }
  0x49   : > { %p408_p2 = scmp.lt.u32.totalorder %s406_s23, %s402_s16  ;;  %p410_p8 = scmp.lt.u32.totalorder %s402_s16, %s611_s4 }
  0x4a   : > { %p404_p10 = pnand %p403_p4, %p668_p9 }
  0x4b   : > { %p409_p5 = por %p408_p2, %p407_p1 }
  0x4c   : > { %p405_p12 = pneg %p404_p10 }
  0x4d   : > { %p411_p11 = por %p410_p8, %p409_p5 }
  0x4f   : > { %p412_p0 = pnand %p411_p11, %p405_p12 }
  0x51   : > { %415 = shalt.err (!%p412_p0)
}
  0x52   : > { %297 = dma.vmem_to_hbm [thread:$0]  (%p668_p9), %s606_s30, 128, %s611_s4, %s176_s5  }
  0x53 PF: > { %s204_s26 = sand.u32 1, %s450_s6   ;;  %p669_p7 = scmp.ne.s32.totalorder %s664_s21, 0 }
  0x54   : > { %p670_p13 = scmp.ge.s32.totalorder %s470_s11, 2  ;;  %s205_s28 = scalar_lea.sflag [#allocation4], %s204_s26 }
  0x56   : > { %p304_p3 = pnand %p670_p13, %p669_p7 }
  0x58   : > { %445 = dma.done.wait (!%p304_p3), %s205_s28, 128  }
  0x59   : > { %447 = vsyncadd (!%p304_p3), %s205_s28, 4294967168  ;;  %s17_s11 = sadd.s32 1, %s470_s11   ;;  %s671_s6 = smov %s454_s7 }
  0x5a   : > { %p14_p6 = scmp.ge.s32.totalorder %s17_s11, 4   ;;  %s672_s7 = smov %s458_s8 }
  0x5b   : > { %s673_s8 = smov %s541_s20  ;;  %s674_s9 = smov %s466_s10 }
  0x5c   : > { %s675_s10 = smov %s677_s14  ;;  %16 = sbr.rel (!%p14_p6) target bundleno = 6 (0x6), region = 69 }
  0x63   :  { %210 = vsyncpa [#allocation3], 1 }
  0x64   :  { %212 = vsyncpa [#allocation3 + $0x1], 1 }
  0x65   :  { %213 = vsyncpa [#allocation4], 1 }
  0x66   :  { %215 = vsyncpa [#allocation4 + $0x1], 1 }

</bundles_post_ra>
